<compile_context>
chip_gen: v7x
topology: tpu7x:2x2x1
jax: 0.10.0
libtpu: 0.0.40
codegen_flags: <defaults>
</compile_context>

<pallas_src>
import functools
import math

import jax
import jax.numpy as jnp
import numpy as np
from jax.experimental import pallas as pl
from jax.experimental.pallas import tpu as pltpu


def _build_pe_table(d_model, max_len):
    """Host-side (numpy, f32) mirror of the PyTorch __init__ table build."""
    position = np.arange(0, max_len, dtype=np.float32)[:, None]
    div_term = np.exp(
        np.arange(0, d_model, 2, dtype=np.float32)
        * np.float32(-math.log(10000.0) / d_model)
    )
    enc = np.zeros((max_len, d_model), dtype=np.float32)
    enc[:, 0::2] = np.sin(position * div_term)
    enc[:, 1::2] = np.cos(position * div_term)
    return enc


def _add_pe_kernel(x_ref, pe_ref, o_ref, *, x_rows):
    """out = pad(x, to max rows) + pe, padding fused in-kernel.

    x_ref:  [x_rows, W]      (the real sequence rows, possibly lane-folded)
    pe_ref: [total_rows, W]  (static positional-encoding slab)
    o_ref:  [total_rows, W]
    """
    total_rows = o_ref.shape[0]
    # Padded rows carry x == 0, so they are just the encoding.
    if x_rows < total_rows:  # static Python condition
        o_ref[...] = pe_ref[...].astype(o_ref.dtype)
    # Real rows: accumulate in f32, cast once at the store.
    o_ref[pl.ds(0, x_rows), :] = (
        x_ref[...].astype(jnp.float32)
        + pe_ref[pl.ds(0, x_rows), :].astype(jnp.float32)
    ).astype(o_ref.dtype)


def positional_encoding_forward(x, pe_table):
    """x: [seq_len, d_model] -> [max_len, d_model] = pad(x) + pe_table."""
    seq_len, d_model = x.shape
    max_len, pe_d = pe_table.shape
    assert pe_d == d_model
    # TODO(synk): the seq_len > max_len branch of the PyTorch forward is not
    # implemented (PyTorch itself would shape-error there); seq_len == max_len
    # (pad_len == 0) is handled.
    assert seq_len <= max_len

    # PyTorch promotion semantics: x + f32 buffer.
    out_dtype = jnp.promote_types(x.dtype, pe_table.dtype)

    # Lane-dense folding: pack `fold` sequence rows into the 128-lane axis so
    # stores are unmasked full-lane vst (free row-major reshape).
    fold = 1
    if d_model < 128 and 128 % d_model == 0:
        f = 128 // d_model
        if seq_len % f == 0 and max_len % f == 0:
            fold = f

    xw = x.reshape(seq_len // fold, fold * d_model)
    pew = pe_table.reshape(max_len // fold, fold * d_model)

    kernel = functools.partial(_add_pe_kernel, x_rows=xw.shape[0])
    vmem_spec = pl.BlockSpec(memory_space=pltpu.MemorySpace.VMEM)
    out = pl.pallas_call(
        kernel,
        out_shape=jax.ShapeDtypeStruct(pew.shape, out_dtype),
        # Single block, no grid: whole (tiny) slabs live in VMEM.
        in_specs=[vmem_spec, vmem_spec],
        out_specs=vmem_spec,
    )(xw, pew)
    return out.reshape(max_len, d_model)


class PositionalEncoding:
    """JAX/Pallas mirror of the PyTorch module (register_buffer -> host table)."""

    def __init__(self, d_model, max_len=4096):
        self.d_model = d_model
        self.max_len = max_len
        self.encoding = jnp.asarray(_build_pe_table(d_model, max_len))

    def __call__(self, x):
        return positional_encoding_forward(x, self.encoding)


def _reference(x, max_len):
    """Pure numpy mirror of the PyTorch forward for the correctness check."""
    x = np.asarray(x)
    seq_len, d_model = x.shape
    enc = _build_pe_table(d_model, max_len)
    x_pad = np.pad(x, ((0, max_len - seq_len), (0, 0)))
    return x_pad + enc


if __name__ == "__main__":
    # Small shapes consistent with the module's forward: x is [seq, d_model].
    seq_len, d_model, max_len = 8, 32, 64

    key = jax.random.PRNGKey(0)
    x = jax.random.normal(key, (seq_len, d_model), dtype=jnp.float32)

    module = PositionalEncoding(d_model, max_len=max_len)
    out = jax.block_until_ready(module(x))

    ref = _reference(x, max_len)
    assert out.shape == (max_len, d_model)
    assert out.dtype == jnp.float32
    assert np.allclose(np.asarray(out), ref, atol=1e-5, rtol=1e-5), "mismatch vs reference"

    print("KERNEL_OK")
</pallas_src>

<mosaic_0001>
module attributes {stable_mosaic.version = 11 : i64} {
  func.func @_add_pe_kernel(%arg0: memref<2x128xf32, #tpu.memory_space<vmem>>, %arg1: memref<16x128xf32, #tpu.memory_space<vmem>>, %arg2: memref<16x128xf32, #tpu.memory_space<vmem>>) attributes {dimension_semantics = [], scalar_prefetch = 0 : i64, scratch_operands = 0 : i64, tpu.core_type = #tpu.core_type<tc>} {
    %c0 = arith.constant 0 : index
    %c0_0 = arith.constant 0 : index
    %0 = vector.load %arg1[%c0, %c0_0] : memref<16x128xf32, #tpu.memory_space<vmem>>, vector<16x128xf32>
    %c0_1 = arith.constant 0 : index
    %c0_2 = arith.constant 0 : index
    %1 = vector.load %arg2[%c0_1, %c0_2] : memref<16x128xf32, #tpu.memory_space<vmem>>, vector<16x128xf32>
    tpu.vector_store %arg2[%c0_1, %c0_2], %0 {strides = array<i32>} : memref<16x128xf32, #tpu.memory_space<vmem>>, vector<16x128xf32>,
    %c0_3 = arith.constant 0 : index
    %c0_4 = arith.constant 0 : index
    %2 = vector.load %arg0[%c0_3, %c0_4] : memref<2x128xf32, #tpu.memory_space<vmem>>, vector<2x128xf32>
    %c0_5 = arith.constant 0 : index
    %c0_6 = arith.constant 0 : index
    %3 = vector.load %arg1[%c0_5, %c0_6] : memref<16x128xf32, #tpu.memory_space<vmem>>, vector<2x128xf32>
    %4 = arith.addf %2, %3 : vector<2x128xf32>
    %c0_7 = arith.constant 0 : index
    %c0_8 = arith.constant 0 : index
    %5 = vector.load %arg2[%c0_7, %c0_8] : memref<16x128xf32, #tpu.memory_space<vmem>>, vector<2x128xf32>
    tpu.vector_store %arg2[%c0_7, %c0_8], %4 {strides = array<i32>} : memref<16x128xf32, #tpu.memory_space<vmem>>, vector<2x128xf32>,
    return
  }
}

</mosaic_0001>

<bundles_post_ra>
// kernel: tpu_custom_call.1
= control target key start
LH: loop header
LB: loop body
LE: loop exit
PB: predicated region body
PF: predicated region fallthrough
CT: control target
= control target key end

     0   :  { %7 = vsyncpa [#allocation3], 0  ;;  %s210_s0 = inlined_call_operand.hbm [shape: f32[2,128], index: 0, kind: input, shape index: {}]   ;;  %s211_s1 = inlined_call_operand.hbm [shape: f32[16,128], index: 1, kind: input, shape index: {}]   ;;  %s212_s2 = inlined_call_operand.hbm [shape: f32[16,128], index: 2, kind: output, shape index: {}]  }
   0x1   :  { %8 = vsyncpa [#allocation6], 0 }
   0x2   :  { %9 = vsyncpa [#allocation4], 0  ;;  %s141_s9 = smov [#allocation2]   ;;  %s142_s11 = smov [#allocation5]  }
   0x3   :  { %s16_s10 = sshll.u32 %s141_s9, 4  ;;  %s25_s12 = sshll.u32 %s142_s11, 4  ;;  %s17_s10 = int_to_ptr.vmem [resolvable:$true] %s16_s10  ;;  %s161_s12 = int_to_ptr.vmem [resolvable:$true] %s25_s12 }
   0x4   :  { %s69_s15 = scalar_lea.hbm %s210_s0, 32 }
   0x5   :  { %p70_p0 = scmp.ne.s32.totalorder %s210_s0, %s69_s15  ;;  %p73_p1 = scmp.lt.u32.totalorder %s69_s15, %s210_s0 }
   0x7   :  { %p75_p2 = pnand %p73_p1, %p70_p0 }
   0x9   :  { %78 = shalt.err (!%p75_p2)
}
   0xa   :  { %s79_s20 = scalar_lea.vmem %s17_s10, 32  ;;  %p84_p4 = scmp.lt.s32.totalorder %s17_s10, %s17_s10 }
   0xb   :  { %p80_p3 = scmp.ne.s32.totalorder %s17_s10, %s79_s20  ;;  %p85_p5 = scmp.lt.s32.totalorder %s79_s20, %s79_s20 }
   0xd   :  { %p86_p6 = por %p85_p5, %p84_p4 }
   0xf   :  { %p87_p7 = pnand %p86_p6, %p80_p3 }
  0x11   :  { %90 = shalt.err (!%p87_p7)
}
  0x12   :  { %19 = dma.hbm_to_vmem [thread:$0]  %s210_s0, 32, %s17_s10, [#allocation3]  }
  0x13   :  { %s91_s25 = scalar_lea.hbm %s211_s1, 256 }
  0x14   :  { %p92_p8 = scmp.ne.s32.totalorder %s211_s1, %s91_s25  ;;  %p95_p9 = scmp.lt.u32.totalorder %s91_s25, %s211_s1 }
  0x16   :  { %p97_p10 = pnand %p95_p9, %p92_p8 }
  0x18   :  { %100 = shalt.err (!%p97_p10)
}
  0x19   :  { %s101_s30 = scalar_lea.vmem %s161_s12, 256  ;;  %p106_p12 = scmp.lt.s32.totalorder %s161_s12, %s161_s12 }
  0x1a   :  { %p102_p11 = scmp.ne.s32.totalorder %s161_s12, %s101_s30  ;;  %p107_p13 = scmp.lt.s32.totalorder %s101_s30, %s101_s30 }
  0x1c   :  { %p108_p0 = por %p107_p13, %p106_p12 }
  0x1e   :  { %p109_p1 = pnand %p108_p0, %p102_p11 }
  0x20   :  { %112 = shalt.err (!%p109_p1)
}
  0x21   :  { %s143_s0 = smov 128   ;;  %s144_s3 = smov 8  }
  0x22   :  { %31 = dma.hbm_to_vmem [thread:$0]  %s211_s1, 256, %s161_s12, [#allocation6], %s143_s0, %s143_s0, %s144_s3  }
  0x23   :  { %135 = dma.done.wait [#allocation3], 32  }
  0x24   :  { %136 = vsyncadd [#allocation3], 4294967264 }
  0x25   :  { %137 = dma.done.wait [#allocation6], 256  }
  0x26   :  { %138 = vsyncadd [#allocation6], 4294967040  ;;  %s145_s6 = smov [#allocation7]   ;;  %v38_v0 = vld [vmem:[#allocation5] sm:$0xff]  ;;  %v39_v1 = vld [vmem:[#allocation5 + $0x8] sm:$0xff] }
  0x27   :  { %s51_s7 = sshll.u32 %s145_s6, 4  ;;  %v42_v2 = vld [vmem:[#allocation2] sm:$0x3]  ;;  %40 = vst [vmem:[#allocation7] sm:$0xff] %v38_v0  ;;  %41 = vst [vmem:[#allocation7 + $0x8] sm:$0xff] %v39_v1  ;;  %s52_s7 = int_to_ptr.vmem [resolvable:$true] %s51_s7 }
  0x28   :  { %v43_v3 = vld [vmem:[#allocation5] sm:$0x3]  ;;  %s113_s8 = scalar_lea.vmem %s52_s7, 256  ;;  %p118_p3 = scmp.lt.s32.totalorder %s52_s7, %s52_s7 }
  0x29   :  { %v44_v4 = vadd.f32 %v43_v3, %v42_v2  ;;  %p114_p2 = scmp.ne.s32.totalorder %s52_s7, %s113_s8  ;;  %p119_p4 = scmp.lt.s32.totalorder %s113_s8, %s113_s8 }
  0x2b   :  { %45 = vst [vmem:[#allocation7] sm:$0x3] %v44_v4  ;;  %p120_p5 = por %p119_p4, %p118_p3 }
  0x2d   :  { %p121_p6 = pnand %p120_p5, %p114_p2 }
  0x2f   :  { %124 = shalt.err (!%p121_p6)
}
  0x30   :  { %s125_s10 = scalar_lea.hbm %s212_s2, 256 }
  0x31   :  { %p126_p7 = scmp.ne.s32.totalorder %s212_s2, %s125_s10  ;;  %p129_p8 = scmp.lt.u32.totalorder %s125_s10, %s212_s2 }
  0x33   :  { %p131_p9 = pnand %p129_p8, %p126_p7 }
  0x35   :  { %134 = shalt.err (!%p131_p9)
}
  0x36   :  { %57 = dma.vmem_to_hbm [thread:$0]  %s52_s7, 256, %s212_s2, [#allocation4], %s143_s0, %s143_s0, %s144_s3  }
  0x37   :  { %139 = dma.done.wait [#allocation4], 256  }
  0x38   :  { %140 = vsyncadd [#allocation4], 4294967040 }
  0x39   :  { %61 = vsyncpa [#allocation3], 1 }
  0x3a   :  { %62 = vsyncpa [#allocation6], 1 }
  0x3b   :  { %63 = vsyncpa [#allocation4], 1 }

</bundles_post_ra>
